<compile_context>
chip_gen: v5e
topology: v5e:2x2
jax: 0.10.0
libtpu: 0.0.40
codegen_flags: <defaults>
</compile_context>

<pallas_src>
import jax
import jax.numpy as jnp
from jax.experimental import pallas as pl
from jax.experimental.pallas import tpu as pltpu

LANES = 128  # vreg lane width: last block dim must be a multiple of this.


def _round_up(v, m):
    return ((v + m - 1) // m) * m


def _logreg_kernel(params_ref, x_ref, o_ref):
    # params_ref: SMEM (2,) f32 = [weight, bias]
    # x_ref / o_ref: lane-dense (tile_rows, 128) VMEM tiles
    w = params_ref[0]
    b = params_ref[1]
    x = x_ref[...].astype(jnp.float32)
    # Pure VPU multiply-add + EUP sigmoid; no MXU involved.
    o_ref[...] = jax.nn.sigmoid(x * w + b).astype(o_ref.dtype)


def logistic_regression_forward(x, weight, bias, *, tile_rows=512):
    """sigmoid(x @ weight.T + bias) for torch.nn.Linear(1, 1).

    x: (..., 1) float32, weight: (1, 1), bias: (1,).  Returns x's shape.
    """
    orig_shape = x.shape
    orig_dtype = x.dtype
    n = x.size  # in_features == out_features == 1 -> one output per element

    # Pack the two parameters into a single SMEM-resident scalar vector.
    params = jnp.concatenate(
        [weight.reshape(-1), bias.reshape(-1)]
    ).astype(jnp.float32)  # (2,)

    # Lane-dense reshape: flatten to 1-D, pad, and view as (rows_pad, 128).
    rows = max(1, -(-n // LANES))
    tile_rows = max(8, (min(tile_rows, _round_up(rows, 8)) // 8) * 8)
    rows_pad = _round_up(rows, tile_rows)
    n_pad = rows_pad * LANES

    flat = x.reshape(-1).astype(jnp.float32)
    flat = jnp.pad(flat, (0, n_pad - n))
    x2d = flat.reshape(rows_pad, LANES)

    grid = (rows_pad // tile_rows,)

    out2d = pl.pallas_call(
        _logreg_kernel,
        out_shape=jax.ShapeDtypeStruct((rows_pad, LANES), jnp.float32),
        grid=grid,
        in_specs=[
            # Scalars stay in SMEM: no padded VMEM tile, no per-step DMA.
            pl.BlockSpec(memory_space=pltpu.MemorySpace.SMEM),
            # Streaming lane-dense row tiles, double-buffered by Pallas.
            pl.BlockSpec((tile_rows, LANES), lambda i: (i, 0)),
        ],
        out_specs=pl.BlockSpec((tile_rows, LANES), lambda i: (i, 0)),
        compiler_params=pltpu.CompilerParams(
            # Row tiles are independent -> shard across TensorCores on v7x.
            dimension_semantics=("parallel",),
        ),
    )(params, x2d)

    out = out2d.reshape(-1)[:n].reshape(orig_shape).astype(orig_dtype)
    return out


if __name__ == "__main__":
    key = jax.random.PRNGKey(0)
    k_x, k_w, k_b = jax.random.split(key, 3)

    # Deterministic parameter init mimicking torch.nn.Linear(1, 1):
    # uniform(-1/sqrt(fan_in), 1/sqrt(fan_in)) with fan_in = 1 -> uniform(-1, 1).
    weight = jax.random.uniform(k_w, (1, 1), jnp.float32, minval=-1.0, maxval=1.0)
    bias = jax.random.uniform(k_b, (1,), jnp.float32, minval=-1.0, maxval=1.0)

    # Case 1: the module's toy-sized batch, (8, 1).
    x_small = jax.random.normal(k_x, (8, 1), jnp.float32)
    y_small = jax.block_until_ready(
        logistic_regression_forward(x_small, weight, bias)
    )
    y_small_ref = jax.nn.sigmoid(x_small @ weight.T + bias)
    assert y_small.shape == (8, 1)
    assert jnp.allclose(y_small, y_small_ref, atol=1e-6), (y_small, y_small_ref)

    # Case 2: a batch that is not a multiple of 128 and spans several grid
    # steps (exercises padding + the tiled, parallel row grid).
    n = 2000
    x_big = jax.random.normal(k_x, (n, 1), jnp.float32)
    y_big = jax.block_until_ready(
        logistic_regression_forward(x_big, weight, bias, tile_rows=8)
    )
    y_big_ref = jax.nn.sigmoid(x_big @ weight.T + bias)
    assert y_big.shape == (n, 1)
    assert jnp.allclose(y_big, y_big_ref, atol=1e-6), (y_big, y_big_ref)

    print("KERNEL_OK")
</pallas_src>

<mosaic_0001>
module attributes {stable_mosaic.version = 11 : i64} {
  func.func @_logreg_kernel(%arg0: i32, %arg1: memref<2xf32, #tpu.memory_space<smem>>, %arg2: memref<8x128xf32, #tpu.memory_space<vmem>>, %arg3: memref<8x128xf32, #tpu.memory_space<vmem>>) attributes {dimension_semantics = [#tpu.dimension_semantics<parallel>], iteration_bounds = array<i64: 1>, scalar_prefetch = 0 : i64, scratch_operands = 0 : i64, tpu.core_type = #tpu.core_type<tc>, window_params = [{transform_indices = @transform_0, window_bounds = array<i64: 2>}, {transform_indices = @transform_1, window_bounds = array<i64: 8, 128>}, {transform_indices = @transform_2, window_bounds = array<i64: 8, 128>}]} {
    %c0 = arith.constant 0 : index
    %0 = memref.load %arg1[%c0] : memref<2xf32, #tpu.memory_space<smem>>
    %c1 = arith.constant 1 : index
    %1 = memref.load %arg1[%c1] : memref<2xf32, #tpu.memory_space<smem>>
    %c0_0 = arith.constant 0 : index
    %c0_1 = arith.constant 0 : index
    %2 = vector.load %arg2[%c0_0, %c0_1] : memref<8x128xf32, #tpu.memory_space<vmem>>, vector<8x128xf32>
    %3 = vector.broadcast %0 : f32 to vector<8x128xf32>
    %4 = arith.mulf %2, %3 : vector<8x128xf32>
    %5 = vector.broadcast %1 : f32 to vector<8x128xf32>
    %6 = arith.addf %4, %5 : vector<8x128xf32>
    %7 = arith.negf %6 : vector<8x128xf32>
    %8 = math.exp %7 : vector<8x128xf32>
    %cst = arith.constant 1.000000e+00 : f32
    %9 = vector.broadcast %cst : f32 to vector<8x128xf32>
    %10 = arith.addf %9, %8 : vector<8x128xf32>
    %11 = arith.divf %9, %10 : vector<8x128xf32>
    %c0_2 = arith.constant 0 : index
    %c0_3 = arith.constant 0 : index
    %12 = vector.load %arg3[%c0_2, %c0_3] : memref<8x128xf32, #tpu.memory_space<vmem>>, vector<8x128xf32>
    tpu.vector_store %arg3[%c0_2, %c0_3], %11 {strides = array<i32>} : memref<8x128xf32, #tpu.memory_space<vmem>>, vector<8x128xf32>,
    return
  }
  func.func @transform_0(%arg0: i32) -> i32 {
    %c0_i32 = arith.constant 0 : i32
    %c0_i32_0 = arith.constant 0 : i32
    return %c0_i32 : i32
  }
  func.func @transform_1(%arg0: i32) -> (i32, i32) {
    %c0_i32 = arith.constant 0 : i32
    %c0_i32_0 = arith.constant 0 : i32
    return %arg0, %c0_i32 : i32, i32
  }
  func.func @transform_2(%arg0: i32) -> (i32, i32) {
    %c0_i32 = arith.constant 0 : i32
    %c0_i32_0 = arith.constant 0 : i32
    return %arg0, %c0_i32 : i32, i32
  }
}

</mosaic_0001>

<bundles_post_ra>
// kernel: tpu_custom_call.1
= control target key start
LH: loop header
LB: loop body
LE: loop exit
PB: predicated region body
PF: predicated region fallthrough
CT: control target
= control target key end

     0   :  { %7 = vsyncpa [#allocation5], 0  ;;  %s186_s0 = inlined_call_operand.hbm [shape: f32[2], index: 0, kind: input, shape index: {}]   ;;  %s187_s1 = inlined_call_operand.hbm [shape: f32[8,128], index: 1, kind: input, shape index: {}]   ;;  %s188_s2 = inlined_call_operand.hbm [shape: f32[8,128], index: 2, kind: output, shape index: {}]  }
   0x1   :  { %8 = vsyncpa [#allocation3], 0 }
   0x2   :  { %9 = vsyncpa [#allocation4], 0  ;;  %s15_s11 = sshll.u32 %s186_s0, 4  ;;  %s24_s14 = sshll.u32 %s187_s1, 4  ;;  %s16_s11 = int_to_ptr.hbm [resolvable:$true] %s15_s11  ;;  %s25_s14 = int_to_ptr.hbm [resolvable:$true] %s24_s14 }
   0x3   :  { %s159_s15 = smov [#allocation2]   ;;  %s160_s16 = smov [#allocation6]  }
   0x4   :  { %18 = dma.hbm_to_smem %s16_s11, 16, %s159_s15, [#allocation5]  }
   0x5   :  { %s26_s17 = sshll.u32 %s160_s16, 4  ;;  %s27_s17 = int_to_ptr.vmem [resolvable:$true] %s26_s17 }
   0x6   :  { %29 = dma.hbm_to_vmem [thread:$0]  %s25_s14, 128, %s27_s17, [#allocation3]  }
   0x7   :  { %153 = dma.done.wait [#allocation5], 16  }
   0x8   :  { %154 = vsyncadd [#allocation5], 4294967280 }
   0x9   :  { %155 = dma.done.wait [#allocation3], 128  }
   0xa   :  { %156 = vsyncadd [#allocation3], 4294967168 }
   0xb   :  { %38 = sfence }
   0xc   :  { %s39_s18 = sld [smem:[#allocation2]]  ;;  %v41_v0 = vld [vmem:[#allocation6] sm:$0xff]  ;;  %s161_s0 = smov [#allocation7]  }
   0xd   :  { %s84_s19 = sld [smem:[#allocation2 + $0x1]]  ;;  %s71_s1 = sshll.u32 %s161_s0, 4  ;;  %s72_s1 = int_to_ptr.vmem [resolvable:$true] %s71_s1 }
   0xe   :  { %s73_s22 = sshll.u32 %s188_s2, 4  ;;  %s74_s22 = int_to_ptr.hbm [resolvable:$true] %s73_s22 }
  0x12   :  { %v42_v1 = vstv %s39_s18 }
  0x13   :  { %v43_v2 = vmul.f32 %v42_v1, %v41_v0  ;;  %v44_v3 = vstv %s84_s19 }
  0x15   :  { %v45_v4 = vadd.f32 %v44_v3, %v43_v2 }
  0x17   :  { %v85_v5 = vmul.f32 -1.442695, %v45_v4 }
  0x19   :  { %89 = vpow2.f32 %v85_v5 }
  0x1f   :  { %v90_v6 = vpop.eup %89 }
  0x20   :  { %v49_v7 = vadd.f32 1.0, %v90_v6 }
  0x22   :  { %91 = vrcp.f32 %v49_v7  ;;  %v61_v10 = vand.u32 2147483648, %v49_v7  ;;  %vm55_vm0 = vweird.f32 %v49_v7  ;;  %v59_v12 = vand.u32 2147483647, %v49_v7 }
  0x24   :  { %v62_v14 = vor.u32 1.1754944e-38, %v61_v10  ;;  %vm60_vm3 = vcmp.eq.f32.partialorder %v59_v12, 8.507059e+37 }
  0x28   :  { %v92_v8 = vpop.eup %91 }
  0x29   :  { %v51_v9 = vmul.f32 %v92_v8, %v49_v7  ;;  %vm56_vm1 = vweird.f32 %v92_v8 }
  0x2a   :  { %vm57_vm2 = vmor %vm55_vm0, %vm56_vm1 }
  0x2b   :  { %v52_v11 = vsub.f32 1.0, %v51_v9 }
  0x2d   :  { %v53_v13 = vmul.f32 %v92_v8, %v52_v11 }
  0x2f   :  { %v54_v15 = vadd.f32 %v92_v8, %v53_v13 }
  0x31   :  { %v58_v16 = vsel %vm57_vm2, %v92_v8, %v54_v15 }
  0x32   :  { %v63_v17 = vsel %vm60_vm3, %v62_v14, %v58_v16 }
  0x33   :  { %65 = vst [vmem:[#allocation7] sm:$0xff] %v63_v17 }
  0x34   :  { %76 = dma.vmem_to_hbm [thread:$0]  %s72_s1, 128, %s74_s22, [#allocation4]  }
  0x35   :  { %157 = dma.done.wait [#allocation4], 128  }
  0x36   :  { %158 = vsyncadd [#allocation4], 4294967168 }
  0x37   :  { %81 = vsyncpa [#allocation3], 1 }
  0x38   :  { %82 = vsyncpa [#allocation4], 1 }
  0x39   :  { %83 = vsyncpa [#allocation5], 1 }

</bundles_post_ra>
